<compile_context>
chip_gen: v7x
topology: tpu7x:2x2x1
jax: 0.10.0
libtpu: 0.0.40
codegen_flags: <defaults>
</compile_context>

<pallas_src>
import functools

import jax
import jax.numpy as jnp
from jax.experimental import pallas as pl
from jax.experimental.pallas import tpu as pltpu


def _round_up(x, m):
    return (x + m - 1) // m * m


def _pick_tm(B, tm_max, min_tiles):
    tm = min(tm_max, _round_up(B, 8))
    # Optionally shrink tm (down to 8) so there are >= min_tiles batch tiles:
    # on v7x set min_tiles=2 so the "parallel" batch axis feeds both TensorCores.
    while tm > 8 and _round_up(B, tm) // tm < min_tiles:
        tm = _round_up(tm // 2, 8)
    return tm


def _w2v_kernel(x_ref, w1_ref, b1_ref, w2_ref, b2_ref, o_ref, acc_ref, h_ref, *, gk):
    p = pl.program_id(1)

    # ---- Layer-1 phase (p < gk): K-tiled accumulation of x @ W1 in f32. ----
    @pl.when(p < gk)
    def _():
        @pl.when(p == 0)
        def _():
            acc_ref[...] = jnp.zeros_like(acc_ref)

        acc_ref[...] += jnp.dot(x_ref[...], w1_ref[...],
                                preferred_element_type=jnp.float32)

        # Finish layer-1: add bias and cast the hidden to bf16 exactly once.
        @pl.when(p == gk - 1)
        def _():
            h_ref[...] = (acc_ref[...] + b1_ref[...]).astype(h_ref.dtype)

    # ---- Layer-2 phase (p >= gk): one lane-dense output-column tile per step. ----
    @pl.when(p >= gk)
    def _():
        out = jnp.dot(h_ref[...], w2_ref[...], preferred_element_type=jnp.float32)
        o_ref[...] = (out + b2_ref[...]).astype(o_ref.dtype)


def prepare_params(w1_t, b1, w2_t, b2, *, tk_max=512, tn_max=1024,
                   compute_dtype=jnp.bfloat16):
    """Pad + cast the weights ONCE (do this at init / after each update, not per call).

    w1_t: [input_dim, hidden_dim]  (== nn.Linear W.weight.T)
    b1:   [hidden_dim]
    w2_t: [hidden_dim, output_dim] (== nn.Linear WT.weight.T)
    b2:   [output_dim]
    """
    in_dim, hid = w1_t.shape
    hid2, out_dim = w2_t.shape
    assert hid == hid2

    tk = min(tk_max, _round_up(in_dim, 128))      # layer-1 contraction tile
    tn = min(tn_max, _round_up(out_dim, 128))     # lane-dense output tile
    K_pad = _round_up(in_dim, tk)
    H_pad = _round_up(hid, 128)
    N_pad = _round_up(out_dim, tn)

    w1p = jnp.pad(w1_t, ((0, K_pad - in_dim), (0, H_pad - hid))).astype(compute_dtype)
    b1p = jnp.pad(b1, (0, H_pad - hid)).astype(jnp.float32).reshape(1, H_pad)
    w2p = jnp.pad(w2_t, ((0, H_pad - hid), (0, N_pad - out_dim))).astype(compute_dtype)
    b2p = jnp.pad(b2, (0, N_pad - out_dim)).astype(jnp.float32).reshape(1, N_pad)

    return dict(w1=w1p, b1=b1p, w2=w2p, b2=b2p,
                in_dim=in_dim, hid=hid, out_dim=out_dim,
                tk=tk, tn=tn, K_pad=K_pad, H_pad=H_pad, N_pad=N_pad,
                compute_dtype=compute_dtype)


def word2vec_forward(x, params, *, tm_max=256, min_batch_tiles=1):
    """Fused two-layer linear forward. x: [B, input_dim] -> [B, output_dim]."""
    B, in_dim = x.shape
    assert in_dim == params["in_dim"]
    tk, tn = params["tk"], params["tn"]
    K_pad, H_pad, N_pad = params["K_pad"], params["H_pad"], params["N_pad"]
    out_dim = params["out_dim"]
    cdt = params["compute_dtype"]

    tm = _pick_tm(B, tm_max, min_batch_tiles)
    B_pad = _round_up(B, tm)
    gm, gk, gn = B_pad // tm, K_pad // tk, N_pad // tn

    # Only the activations are padded/cast per call (zero padding keeps the affine
    # math exact; the result is sliced back below).
    xp = jnp.pad(x.astype(cdt), ((0, B_pad - B), (0, K_pad - in_dim)))

    isz = jnp.dtype(cdt).itemsize
    flops = 2 * B_pad * K_pad * H_pad + 2 * B_pad * H_pad * N_pad
    bytes_accessed = int(
        xp.size * isz                                       # activations (read once)
        + gm * (params["w1"].size * isz                     # W1 streamed per batch tile
                + params["w2"].size * isz                   # W2 streamed per batch tile
                + params["b2"].size * 4)
        + params["b1"].size * 4
        + B_pad * N_pad * x.dtype.itemsize)                 # output

    kernel = functools.partial(_w2v_kernel, gk=gk)

    out_p = pl.pallas_call(
        kernel,
        out_shape=jax.ShapeDtypeStruct((B_pad, N_pad), x.dtype),
        grid_spec=pltpu.PrefetchScalarGridSpec(
            num_scalar_prefetch=0,
            # Fused phase axis: [0, gk) = layer-1 K steps, [gk, gk+gn) = output tiles.
            grid=(gm, gk + gn),
            in_specs=[
                # x batch tile, K-tiled; frozen at the last K tile during layer-2
                # (constant block index -> no re-DMA).
                pl.BlockSpec((tm, tk), lambda i, p: (i, jnp.minimum(p, gk - 1))),
                # W1 K tile (streamed, never fully resident).
                pl.BlockSpec((tk, H_pad), lambda i, p: (jnp.minimum(p, gk - 1), 0)),
                # b1 (grid-invariant, fetched once).
                pl.BlockSpec((1, H_pad), lambda i, p: (0, 0)),
                # W2 lane-dense column tile; tile 0 prefetches during layer-1 phase.
                pl.BlockSpec((H_pad, tn), lambda i, p: (0, jnp.maximum(p - gk, 0))),
                # b2 tile.
                pl.BlockSpec((1, tn), lambda i, p: (0, jnp.maximum(p - gk, 0))),
            ],
            out_specs=pl.BlockSpec((tm, tn),
                                   lambda i, p: (i, jnp.maximum(p - gk, 0))),
            scratch_shapes=[
                pltpu.VMEM((tm, H_pad), jnp.float32),   # layer-1 f32 accumulator
                pltpu.VMEM((tm, H_pad), cdt),           # cached bf16 hidden
            ],
        ),
        compiler_params=pltpu.CompilerParams(
            # Batch tiles independent -> shard across v7x TensorCores (no-op on
            # v5e/v6e). Phase axis carries the hidden cache -> must stay serial.
            dimension_semantics=("parallel", "arbitrary"),
            vmem_limit_bytes=32 * 1024 * 1024,
        ),
        cost_estimate=pl.CostEstimate(
            flops=flops, transcendentals=0, bytes_accessed=bytes_accessed),
    )(xp, params["w1"], params["b1"], params["w2"], params["b2"])

    return out_p[:B, :out_dim]


def init_params(key, input_dim, hidden_dim, output_dim, dtype=jnp.float32):
    """Deterministic init mimicking nn.Linear default U(-k, k), k = 1/sqrt(fan_in)."""
    k1, k2, k3, k4 = jax.random.split(key, 4)
    lim1 = 1.0 / jnp.sqrt(jnp.array(input_dim, dtype))
    lim2 = 1.0 / jnp.sqrt(jnp.array(hidden_dim, dtype))
    # Weights stored directly in [in, out] layout (== nn.Linear.weight.T).
    w1_t = jax.random.uniform(k1, (input_dim, hidden_dim), dtype, -lim1, lim1)
    b1 = jax.random.uniform(k2, (hidden_dim,), dtype, -lim1, lim1)
    w2_t = jax.random.uniform(k3, (hidden_dim, output_dim), dtype, -lim2, lim2)
    b2 = jax.random.uniform(k4, (output_dim,), dtype, -lim2, lim2)
    return w1_t, b1, w2_t, b2


def _ref_forward_bf16(x, w1_t, b1, w2_t, b2):
    """Reference matching the kernel's numerics: bf16 operands, f32 accumulation."""
    bf, f32 = jnp.bfloat16, jnp.float32
    h = jnp.dot(x.astype(bf), w1_t.astype(bf), preferred_element_type=f32)
    h = h + b1.astype(f32)
    o = jnp.dot(h.astype(bf), w2_t.astype(bf), preferred_element_type=f32)
    return o + b2.astype(f32)


if __name__ == "__main__":
    # Small shapes consistent with the module: "vocab"-dim input vectors in,
    # vocab logits out.
    batch = 16
    input_dim = 256   # vocab size (input one-hot dim)
    hidden_dim = 64   # embedding dim
    output_dim = 384  # vocab size (output logits)

    key = jax.random.PRNGKey(0)
    kx, kp = jax.random.split(key)
    x = jax.random.normal(kx, (batch, input_dim), jnp.float32)
    w1_t, b1, w2_t, b2 = init_params(kp, input_dim, hidden_dim, output_dim)

    # 1) Default (production-sized) tiles — grid collapses to a few steps here.
    params = prepare_params(w1_t, b1, w2_t, b2)
    out = jax.block_until_ready(word2vec_forward(x, params))

    # 2) Deliberately small tiles so the phase grid (gm=2, gk=2, gn=3) is exercised.
    params_s = prepare_params(w1_t, b1, w2_t, b2, tk_max=128, tn_max=128)
    out_s = jax.block_until_ready(
        word2vec_forward(x, params_s, tm_max=8, min_batch_tiles=2))

    ref = _ref_forward_bf16(x, w1_t, b1, w2_t, b2)
    assert out.shape == (batch, output_dim)
    assert out_s.shape == (batch, output_dim)
    assert jnp.allclose(out, ref, atol=1e-2, rtol=1e-2)
    assert jnp.allclose(out_s, ref, atol=1e-2, rtol=1e-2)
    assert jnp.allclose(out, out_s, atol=1e-2, rtol=1e-2)

    print("KERNEL_OK")
</pallas_src>

<mosaic_0001>
module attributes {stable_mosaic.version = 11 : i64} {
  func.func @_w2v_kernel(%arg0: i32, %arg1: i32, %arg2: memref<16x256xbf16, #tpu.memory_space<vmem>>, %arg3: memref<256x128xbf16, #tpu.memory_space<vmem>>, %arg4: memref<1x128xf32, #tpu.memory_space<vmem>>, %arg5: memref<128x384xbf16, #tpu.memory_space<vmem>>, %arg6: memref<1x384xf32, #tpu.memory_space<vmem>>, %arg7: memref<16x384xf32, #tpu.memory_space<vmem>>, %arg8: memref<16x128xf32, #tpu.memory_space<vmem>>, %arg9: memref<16x128xbf16, #tpu.memory_space<vmem>>) attributes {dimension_semantics = [#tpu.dimension_semantics<parallel>, #tpu.dimension_semantics<arbitrary>], iteration_bounds = array<i64: 1, 2>, scalar_prefetch = 0 : i64, scratch_operands = 2 : i64, tpu.core_type = #tpu.core_type<tc>, window_params = [{transform_indices = @transform_0, window_bounds = array<i64: 16, 256>}, {transform_indices = @transform_1, window_bounds = array<i64: 256, 128>}, {pipeline_mode = #tpu.pipeline_mode<synchronous>, transform_indices = @transform_2, window_bounds = array<i64: 1, 128>}, {transform_indices = @transform_3, window_bounds = array<i64: 128, 384>}, {transform_indices = @transform_4, window_bounds = array<i64: 1, 384>}, {transform_indices = @transform_5, window_bounds = array<i64: 16, 384>}]} {
    %c1_i32 = arith.constant 1 : i32
    %0 = arith.cmpi slt, %arg1, %c1_i32 : i32
    %1 = arith.extui %0 : i1 to i32
    %c0_i32 = arith.constant 0 : i32
    %2 = arith.cmpi ne, %1, %c0_i32 : i32
    scf.if %2 {
      %c0_i32_2 = arith.constant 0 : i32
      %6 = arith.cmpi eq, %arg1, %c0_i32_2 : i32
      %7 = arith.extui %6 : i1 to i32
      %c0_i32_3 = arith.constant 0 : i32
      %8 = arith.cmpi ne, %7, %c0_i32_3 : i32
      scf.if %8 {
        %cst_13 = arith.constant 0.000000e+00 : f32
        %18 = vector.broadcast %cst_13 : f32 to vector<16x128xf32>
        %c0_14 = arith.constant 0 : index
        %c0_15 = arith.constant 0 : index
        %19 = vector.load %arg8[%c0_14, %c0_15] : memref<16x128xf32, #tpu.memory_space<vmem>>, vector<16x128xf32>
        tpu.vector_store %arg8[%c0_14, %c0_15], %18 {strides = array<i32>} : memref<16x128xf32, #tpu.memory_space<vmem>>, vector<16x128xf32>,
      } else {
      }
      %c0 = arith.constant 0 : index
      %c0_4 = arith.constant 0 : index
      %9 = vector.load %arg8[%c0, %c0_4] : memref<16x128xf32, #tpu.memory_space<vmem>>, vector<16x128xf32>
      %c0_5 = arith.constant 0 : index
      %c0_6 = arith.constant 0 : index
      %10 = vector.load %arg2[%c0_5, %c0_6] : memref<16x256xbf16, #tpu.memory_space<vmem>>, vector<16x256xbf16>
      %c0_7 = arith.constant 0 : index
      %c0_8 = arith.constant 0 : index
      %11 = vector.load %arg3[%c0_7, %c0_8] : memref<256x128xbf16, #tpu.memory_space<vmem>>, vector<256x128xbf16>
      %cst = arith.constant dense<0.000000e+00> : vector<16x128xf32>
      %12 = tpu.matmul %10, %11, %cst {dimension_numbers = #tpu.dot_dimension_numbers<[1], [0], [0], [1], [0, 0, 1, 1], [], []>} : vector<16x256xbf16>, vector<256x128xbf16>, vector<16x128xf32> -> vector<16x128xf32>
      %13 = arith.addf %9, %12 : vector<16x128xf32>
      %c0_9 = arith.constant 0 : index
      %c0_10 = arith.constant 0 : index
      %14 = vector.load %arg8[%c0_9, %c0_10] : memref<16x128xf32, #tpu.memory_space<vmem>>, vector<16x128xf32>
      tpu.vector_store %arg8[%c0_9, %c0_10], %13 {strides = array<i32>} : memref<16x128xf32, #tpu.memory_space<vmem>>, vector<16x128xf32>,
      %c0_i32_11 = arith.constant 0 : i32
      %15 = arith.cmpi eq, %arg1, %c0_i32_11 : i32
      %16 = arith.extui %15 : i1 to i32
      %c0_i32_12 = arith.constant 0 : i32
      %17 = arith.cmpi ne, %16, %c0_i32_12 : i32
      scf.if %17 {
        %c0_13 = arith.constant 0 : index
        %c0_14 = arith.constant 0 : index
        %18 = vector.load %arg8[%c0_13, %c0_14] : memref<16x128xf32, #tpu.memory_space<vmem>>, vector<16x128xf32>
        %c0_15 = arith.constant 0 : index
        %c0_16 = arith.constant 0 : index
        %19 = vector.load %arg4[%c0_15, %c0_16] : memref<1x128xf32, #tpu.memory_space<vmem>>, vector<1x128xf32>
        %20 = vector.broadcast %19 : vector<1x128xf32> to vector<16x128xf32>
        %21 = arith.addf %18, %20 : vector<16x128xf32>
        %22 = arith.truncf %21 : vector<16x128xf32> to vector<16x128xbf16>
        %c0_17 = arith.constant 0 : index
        %c0_18 = arith.constant 0 : index
        %23 = vector.load %arg9[%c0_17, %c0_18] : memref<16x128xbf16, #tpu.memory_space<vmem>>, vector<16x128xbf16>
        tpu.vector_store %arg9[%c0_17, %c0_18], %22 {strides = array<i32>} : memref<16x128xbf16, #tpu.memory_space<vmem>>, vector<16x128xbf16>,
      } else {
      }
    } else {
    }
    %c1_i32_0 = arith.constant 1 : i32
    %3 = arith.cmpi sge, %arg1, %c1_i32_0 : i32
    %4 = arith.extui %3 : i1 to i32
    %c0_i32_1 = arith.constant 0 : i32
    %5 = arith.cmpi ne, %4, %c0_i32_1 : i32
    scf.if %5 {
      %c0 = arith.constant 0 : index
      %c0_2 = arith.constant 0 : index
      %6 = vector.load %arg9[%c0, %c0_2] : memref<16x128xbf16, #tpu.memory_space<vmem>>, vector<16x128xbf16>
      %c0_3 = arith.constant 0 : index
      %c0_4 = arith.constant 0 : index
      %7 = vector.load %arg5[%c0_3, %c0_4] : memref<128x384xbf16, #tpu.memory_space<vmem>>, vector<128x384xbf16>
      %cst = arith.constant dense<0.000000e+00> : vector<16x384xf32>
      %8 = tpu.matmul %6, %7, %cst {dimension_numbers = #tpu.dot_dimension_numbers<[1], [0], [0], [1], [0, 0, 1, 1], [], []>} : vector<16x128xbf16>, vector<128x384xbf16>, vector<16x384xf32> -> vector<16x384xf32>
      %c0_5 = arith.constant 0 : index
      %c0_6 = arith.constant 0 : index
      %9 = vector.load %arg6[%c0_5, %c0_6] : memref<1x384xf32, #tpu.memory_space<vmem>>, vector<1x384xf32>
      %10 = vector.broadcast %9 : vector<1x384xf32> to vector<16x384xf32>
      %11 = arith.addf %8, %10 : vector<16x384xf32>
      %c0_7 = arith.constant 0 : index
      %c0_8 = arith.constant 0 : index
      %12 = vector.load %arg7[%c0_7, %c0_8] : memref<16x384xf32, #tpu.memory_space<vmem>>, vector<16x384xf32>
      tpu.vector_store %arg7[%c0_7, %c0_8], %11 {strides = array<i32>} : memref<16x384xf32, #tpu.memory_space<vmem>>, vector<16x384xf32>,
    } else {
    }
    return
  }
  func.func @transform_0(%arg0: i32, %arg1: i32) -> (i32, i32) {
    %c0_i32 = arith.constant 0 : i32
    %0 = arith.minsi %arg1, %c0_i32 : i32
    %c0_i32_0 = arith.constant 0 : i32
    return %arg0, %0 : i32, i32
  }
  func.func @transform_1(%arg0: i32, %arg1: i32) -> (i32, i32) {
    %c0_i32 = arith.constant 0 : i32
    %0 = arith.minsi %arg1, %c0_i32 : i32
    %c0_i32_0 = arith.constant 0 : i32
    %c0_i32_1 = arith.constant 0 : i32
    return %0, %c0_i32_0 : i32, i32
  }
  func.func @transform_2(%arg0: i32, %arg1: i32) -> (i32, i32) {
    %c0_i32 = arith.constant 0 : i32
    %c0_i32_0 = arith.constant 0 : i32
    %c0_i32_1 = arith.constant 0 : i32
    return %c0_i32, %c0_i32_0 : i32, i32
  }
  func.func @transform_3(%arg0: i32, %arg1: i32) -> (i32, i32) {
    %c1_i32 = arith.constant 1 : i32
    %0 = arith.subi %arg1, %c1_i32 : i32
    %c0_i32 = arith.constant 0 : i32
    %1 = arith.maxsi %0, %c0_i32 : i32
    %c0_i32_0 = arith.constant 0 : i32
    %c0_i32_1 = arith.constant 0 : i32
    return %c0_i32_0, %1 : i32, i32
  }
  func.func @transform_4(%arg0: i32, %arg1: i32) -> (i32, i32) {
    %c1_i32 = arith.constant 1 : i32
    %0 = arith.subi %arg1, %c1_i32 : i32
    %c0_i32 = arith.constant 0 : i32
    %1 = arith.maxsi %0, %c0_i32 : i32
    %c0_i32_0 = arith.constant 0 : i32
    %c0_i32_1 = arith.constant 0 : i32
    return %c0_i32_0, %1 : i32, i32
  }
  func.func @transform_5(%arg0: i32, %arg1: i32) -> (i32, i32) {
    %c1_i32 = arith.constant 1 : i32
    %0 = arith.subi %arg1, %c1_i32 : i32
    %c0_i32 = arith.constant 0 : i32
    %1 = arith.maxsi %0, %c0_i32 : i32
    %c0_i32_0 = arith.constant 0 : i32
    return %arg0, %1 : i32, i32
  }
}

</mosaic_0001>

<bundles_post_ra>
// kernel: tpu_custom_call.1
= control target key start
LH: loop header
LB: loop body
LE: loop exit
PB: predicated region body
PF: predicated region fallthrough
CT: control target
= control target key end

     0   :  { %10 = vsyncpa [#allocation5], 0  ;;  %s1927_s0 = inlined_call_operand.hbm [shape: bf16[16,256], index: 0, kind: input, shape index: {}]   ;;  %s1928_s1 = inlined_call_operand.hbm [shape: bf16[256,128], index: 1, kind: input, shape index: {}]   ;;  %s1929_s2 = inlined_call_operand.vmem [shape: f32[1,128], index: 2, kind: input, shape index: {}]   ;;  %s1930_s3 = inlined_call_operand.hbm [shape: bf16[128,384], index: 3, kind: input, shape index: {}]   ;;  %s1931_s4 = inlined_call_operand.vmem [shape: f32[1,384], index: 4, kind: input, shape index: {}]   ;;  %s1932_s5 = inlined_call_operand.hbm [shape: f32[16,384], index: 5, kind: output, shape index: {}]  }
   0x1   :  { %12 = vsyncpa [#allocation5 + $0x1], 0 }
   0x2   :  { %13 = vsyncpa [#allocation8], 0 }
   0x3   :  { %15 = vsyncpa [#allocation8 + $0x1], 0 }
   0x4   :  { %16 = vsyncpa [#allocation6], 0 }
   0x5   :  { %18 = vsyncpa [#allocation6 + $0x1], 0  ;;  %s1603_s18 = smov 0   ;;  %s1605_s19 = smov 0  }
   0x6   :  { %s1607_s20 = smov 0   ;;  %s1609_s21 = smov 0  }
   0x7   :  { %s1611_s22 = smov 0   ;;  %s1613_s23 = smov 0  }
   0x8   :  { %s1615_s24 = smov 0  }
   0x9 LB: > { %s1637_s25 = sadd.s32 4294967295, %s1555_s24   ;;  %s33_s26 = sadd.s32 1, %s1551_s23  ;;  %s1555_s24 = sphi %s1615_s24, %s24_s24   ;;  %s1551_s23 = sphi %s1613_s23, %s1961_s23   ;;  %s1547_s22 = sphi %s1611_s22, %s1960_s22   ;;  %s1543_s21 = sphi %s1609_s21, %s1917_s21   ;;  %s1539_s20 = sphi %s1607_s20, %s1959_s20   ;;  %s1535_s19 = sphi %s1605_s19, %s1912_s19   ;;  %s1531_s18 = sphi %s1603_s18, %s1958_s18  }
   0xa   : > { %p34_p0 = scmp.ge.s32.totalorder %s33_s26, 2  ;;  %p1527_p1 = scmp.ne.s32.totalorder %s1543_s21, 0 }
   0xb   : > { %p1935_p2 = scmp.eq.s32.totalorder %s1555_s24, 0  ;;  %p62_p3 = scmp.ne.s32.totalorder %s1543_s21, %s1539_s20 }
   0xc   : > { %s1963_s26 = smov (%p34_p0, %s33_s26), 0  ;;  %p1934_p4 = scmp.eq.s32.totalorder %s1637_s25, 0 }
   0xd   : > { %p58_p5 = por %p1527_p1, %p1935_p2  ;;  %p1933_p8 = scmp.lt.s32.totalorder %s1555_s24, 2 }
   0xe   : > { %p1650_p6 = por %p1934_p4, %p62_p3  ;;  %s264_s28 = sand.u32 1, %s1555_s24  }
   0xf   : > { %p1659_p9 = pnand %p1933_p8, %p58_p5  ;;  %s1557_s30 = smov [#allocation7]  }
  0x10   : > { %s1940_s27 = scalar_select %p1650_p6, 1, 0 }
  0x11   : > { %s277_s6 = sshll.u32 %s1557_s30, 4  ;;  %s1666_s7 = scalar_lea.sflag [#allocation8], %s264_s28  ;;  %s1663_s6 = int_to_ptr.vmem [resolvable:$true] %s277_s6 }
  0x12   : > { %s1357_s10 = scalar_lea.hbm %s1928_s1, 2048  ;;  %p1359_p12 = pneg %p1659_p9 }
  0x13   : > { %p1358_p11 = scmp.ne.s32.totalorder %s1928_s1, %s1357_s10  ;;  %p1364_p1 = scmp.lt.u32.totalorder %s1357_s10, %s1357_s10 }
  0x14   : > { %p1366_p3 = scmp.lt.u32.totalorder %s1357_s10, %s1928_s1 }
  0x15   : > { %p1360_p13 = pnand %p1359_p12, %p1358_p11 }
  0x16   : > { %p1367_p5 = por %p1366_p3, %p1364_p1 }
  0x17   : > { %p1361_p0 = pneg %p1360_p13 }
  0x19   : > { %p1368_p7 = pnand %p1367_p5, %p1361_p0 }
  0x1b   : > { %1371 = shalt.err (!%p1368_p7)
}
  0x1c   : > { %s1372_s15 = scalar_lea.vmem %s1663_s6, 2048  ;;  %s1379_s16 = scalar_lea.vmem %s1663_s6, 4096 }
  0x1d   : > { %p1373_p8 = scmp.ne.s32.totalorder %s1663_s6, %s1372_s15  ;;  %p1380_p13 = scmp.lt.s32.totalorder %s1663_s6, %s1663_s6 }
  0x1e   : > { %p1381_p2 = scmp.lt.s32.totalorder %s1379_s16, %s1372_s15 }
  0x1f   : > { %p1375_p4 = pnand %p1373_p8, %p1359_p12 }
  0x20   : > { %p1382_p10 = por %p1381_p2, %p1380_p13 }
  0x21   : > { %p1376_p11 = pneg %p1375_p4 }
  0x23   : > { %p1383_p6 = pnand %p1382_p10, %p1376_p11 }
  0x25   : > { %1386 = shalt.err (!%p1383_p6)
}
  0x26   : > { %s1558_s17 = smov 64   ;;  %s1559_s20 = smov 4  }
  0x27   : > { %1212 = dma.hbm_to_vmem [thread:$0]  (!%p1659_p9), %s1928_s1, 2048, %s1663_s6, %s1666_s7, %s1558_s17, %s1558_s17, %s1559_s20  }
  0x28   : > { %p323_p4 = scmp.lt.s32.totalorder %s1555_s24, 3  ;;  %p1942_p7 = scmp.ge.s32.totalorder %s1555_s24, 1 }
  0x29   : > { %s1560_s9 = smov [#allocation4]   ;;  %s1387_s13 = scalar_lea.hbm %s1927_s0, 256 }
  0x2a   : > { %p1700_p8 = pnand %p1942_p7, %p323_p4  ;;  %s254_s10 = sshll.u32 %s1560_s9, 4  ;;  %s255_s10 = int_to_ptr.vmem [resolvable:$true] %s254_s10 }
  0x2b   : > { %p1388_p2 = scmp.ne.s32.totalorder %s1927_s0, %s1387_s13  ;;  %p1394_p0 = scmp.lt.u32.totalorder %s1387_s13, %s1387_s13 }
  0x2c   : > { %s1943_s8 = scalar_select %p1700_p8, 1, 0 }
  0x2d   : > { %p1390_p6 = pnand %p1388_p2, %p1359_p12  ;;  %p1396_p1 = scmp.lt.u32.totalorder %s1387_s13, %s1927_s0 }
  0x2f   : > { %p1391_p10 = pneg %p1390_p6  ;;  %p1397_p3 = por %p1396_p1, %p1394_p0 }
  0x31   : > { %p1398_p5 = pnand %p1397_p3, %p1391_p10 }
  0x33   : > { %1401 = shalt.err (!%p1398_p5)
}
  0x34   : > { %s1402_s17 = scalar_lea.vmem %s255_s10, 256  ;;  %s1409_s20 = scalar_lea.vmem %s255_s10, 512 }
  0x35   : > { %p1403_p11 = scmp.ne.s32.totalorder %s255_s10, %s1402_s17  ;;  %p1410_p7 = scmp.lt.s32.totalorder %s255_s10, %s255_s10 }
  0x36   : > { %p1411_p8 = scmp.lt.s32.totalorder %s1409_s20, %s1402_s17 }
  0x37   : > { %p1405_p13 = pnand %p1403_p11, %p1359_p12 }
  0x38   : > { %p1412_p2 = por %p1411_p8, %p1410_p7 }
  0x39   : > { %p1406_p4 = pneg %p1405_p13 }
  0x3b   : > { %p1413_p6 = pnand %p1412_p2, %p1406_p4 }
  0x3d   : > { %1416 = shalt.err (!%p1413_p6)
}
  0x3e   : > { %s1561_s28 = smov 128   ;;  %s1562_s30 = smov 8  }
  0x3f   : > { %1209 = dma.hbm_to_vmem [thread:$0]  (!%p1659_p9), %s1927_s0, 256, %s255_s10, [#allocation5], %s1561_s28, %s1561_s28, %s1562_s30  }
  0x40   : > { %s1068_s12 = sadd.s32 4294967294, %s1555_s24   ;;  %p1528_p12 = scmp.ne.s32.totalorder %s1535_s19, 0 }
  0x41   : > { %p1944_p8 = scmp.eq.s32.totalorder %s1555_s24, 0  ;;  %p145_p0 = scmp.ne.s32.totalorder %s1535_s19, %s1531_s18 }
  0x42   : > { %p209_p1 = scmp.eq.s32.totalorder %s1637_s25, 1  ;;  %p1945_p3 = scmp.eq.s32.totalorder %s1637_s25, 0 }
  0x43   : > { %p141_p10 = por %p1528_p12, %p1944_p8  ;;  %p215_p13 = scmp.eq.s32.totalorder %s1068_s12, 1 }
  0x44   : > { %p1733_p5 = por %p145_p0, %p1945_p3  ;;  %p1737_p11 = por %p1528_p12, %p209_p1 }
  0x45   : > { %p1741_p4 = por %p215_p13, %p145_p0  ;;  %p1949_p9 = scmp.lt.s32.totalorder %s1555_s24, 2 }
  0x46   : > { %s1946_s13 = scalar_select %p1733_p5, 1, 0 }
  0x47   : > { %s1947_s14 = scalar_select %p1737_p11, 1, 0 }
  0x48   : > { %s1948_s29 = scalar_select %p1741_p4, 1, 0 }
  0x49   : > { %p1747_p7 = pnand %p1949_p9, %p141_p10  ;;  %s1563_s15 = smov [#allocation9]  }
  0x4a   : > { %s301_s6 = sshll.u32 %s1563_s15, 4  ;;  %s1417_s20 = scalar_lea.hbm %s1930_s3, 3072  ;;  %s302_s6 = int_to_ptr.vmem [resolvable:$true] %s301_s6 }
  0x4b   : > { %s1950_s10 = scalar_select %p1747_p7, 1, 0 }
  0x4c   : > { %p1418_p2 = scmp.ne.s32.totalorder %s1930_s3, %s1417_s20  ;;  %p1419_p6 = pneg %p1747_p7 }
  0x4d   : > { %p1424_p10 = scmp.lt.u32.totalorder %s1417_s20, %s1417_s20  ;;  %p1426_p0 = scmp.lt.u32.totalorder %s1417_s20, %s1930_s3 }
  0x4e   : > { %p1420_p12 = pnand %p1419_p6, %p1418_p2 }
  0x4f   : > { %p1427_p1 = por %p1426_p0, %p1424_p10 }
  0x50   : > { %p1421_p8 = pneg %p1420_p12 }
  0x52   : > { %p1428_p3 = pnand %p1427_p1, %p1421_p8 }
  0x54   : > { %1431 = shalt.err (!%p1428_p3)
}
  0x55   : > { %s1432_s12 = scalar_lea.vmem %s302_s6, 3072  ;;  %s1439_s15 = scalar_lea.vmem %s302_s6, 6144 }
  0x56   : > { %p1433_p13 = scmp.ne.s32.totalorder %s302_s6, %s1432_s12  ;;  %p1440_p11 = scmp.lt.s32.totalorder %s302_s6, %s302_s6 }
  0x57   : > { %p1441_p5 = scmp.lt.s32.totalorder %s1439_s15, %s1432_s12 }
  0x58   : > { %p1435_p9 = pnand %p1433_p13, %p1419_p6 }
  0x59   : > { %p1442_p7 = por %p1441_p5, %p1440_p11 }
  0x5a   : > { %p1436_p4 = pneg %p1435_p9 }
  0x5c   : > { %p1443_p2 = pnand %p1442_p7, %p1436_p4 }
  0x5e   : > { %1446 = shalt.err (!%p1443_p2)
}
  0x5f   : > { %s1564_s16 = smov 192   ;;  %s1565_s17 = smov 12  }
  0x60   : > { %p1951_p12 = scmp.ne.s32.totalorder %s1950_s10, 0  ;;  %p1952_p8 = scmp.ne.s32.totalorder %s1943_s8, 0 }
  0x61   : > { %s329_s30 = sand.u32 (!%p1952_p8), 1, %s1543_s21   ;;  %p1953_p5 = scmp.ne.s32.totalorder (!%p1952_p8), %s1940_s27, 0 }
  0x62   : > { %1215 = dma.hbm_to_vmem [thread:$0]  (!%p1951_p12), %s1930_s3, 3072, %s302_s6, %s1666_s7, %s1564_s16, %s1564_s16, %s1565_s17  }
  0x63   : > { %327 = sbr.rel (%p1952_p8) target bundleno = 676 (0x2a4), region = 40  ;;  %s1086_s9 = sshll.u32 (!%p1952_p8), %s329_s30, 4 }
  0x64   : > { %s330_s11 = scalar_lea.sflag (!%p1952_p8), [#allocation5], %s329_s30  ;;  %s1771_s12 = scalar_lea.vmem (!%p1952_p8), [#allocation4], %s1086_s9 }
  0x6a   : > { %1512 = dma.done.wait (%p1953_p5), %s330_s11, 256  }
  0x6b   : > { %1514 = vsyncadd (%p1953_p5), %s330_s11, 4294967040  ;;  %s338_s10 = sand.u32 1, %s1637_s25   ;;  %s1087_s15 = sshll.u32 %s329_s30, 7 }
  0x6c   : > { %s339_s7 = scalar_lea.sflag [#allocation8], %s338_s10  ;;  %s1778_s6 = scalar_lea.vmem [#allocation7], %s1087_s15 }
  0x6d   : > { %1516 = dma.done.wait (%p1953_p5), %s339_s7, 2048  }
  0x6e   : > { %1518 = vsyncadd (%p1953_p5), %s339_s7, 4294965248  ;;  %s1785_s8 = sand.u32 1, %s1535_s19   ;;  %p1954_p11 = scmp.ne.s32.totalorder %s1946_s13, 0 }
  0x6f   : > { %s1196_s16 = smul.u32 192, %s1785_s8 }
  0x71   : > { %s1788_s17 = scalar_lea.vmem [#allocation9], %s1196_s16 }
  0x72   : > { %1520 = dma.done.wait (%p1954_p11), %s339_s7, 3072  }
  0x73   : > { %1522 = vsyncadd (%p1954_p11), %s339_s7, 4294964224  ;;  %s1197_s25 = smul.u32 48, %s1785_s8  ;;  %s1088_s28 = sadd.s32 4294967295, %s1547_s22 }
  0x74   : > { %p407_p4 = scmp.gt.s32.totalorder %s1088_s28, 0  ;;  %p1089_p6 = scmp.ge.s32.totalorder %s1547_s22, 1 }
  0x75   : > { %s1805_s11 = scalar_lea.vmem [#allocation10], %s1197_s25  ;;  %p1090_p10 = scmp.ne.s32.totalorder (!%p1089_p6), %s1547_s22, 0 }
  0x76   : > { %s1965_s28 = smov (!%p407_p4, %s1088_s28), 0  ;;  %426 = sbr.rel (%p1089_p6) target bundleno = 397 (0x18d), region = 56 }
  0x77   : > { %s409_s27 = smul.u32 3, %s1965_s28 }
  0x79   : > { %p410_p7 = scmp.lt.s32.totalorder %s409_s27, 2 }
  0x7b   : > { %s1967_s27 = smov (!%p410_p7, %s409_s27), 2 }
  0x7c   : > { %s412_s9 = scalar_lea.vmem %s1931_s4, %s1967_s27 }
  0x7d   : > { %430 = sbr.rel (%p1090_p10) target bundleno = 132 (0x84), region = 60  ;;  %v1566_v0 = vmov (!%p1090_p10), 0.0  }
  0x7e   : > { %431 = vst [vmem:[#allocation2] sm:$0xff] (!%p1090_p10), %v1566_v0  ;;  %432 = vst [vmem:[#allocation2 + $0x8] sm:$0xff] (!%p1090_p10), %v1566_v0 }
  0x84 PF: > { %v1306_v1 = vld [vmem:[%s1778_s6 + $0x40] sm:$0xff]   ;;  %v1308_v3 = vld [vmem:[%s1778_s6 + $0x48] sm:$0xff]   ;;  %v1310_v5 = vld [vmem:[%s1778_s6 + $0x50] sm:$0xff]  }
  0x85   : > { %v1307_v2 = vld [vmem:[%s1778_s6] sm:$0xff]   ;;  %1144 = vmatprep.subr.bf16.mxu0 %v1306_v1  ;;  %v1309_v4 = vld [vmem:[%s1778_s6 + $0x8] sm:$0xff]   ;;  %v1311_v6 = vld [vmem:[%s1778_s6 + $0x10] sm:$0xff]  }
  0x86   : > { %1145 = vmatpush3.bf16.msra.mxu0 %v1307_v2  ;;  %v1312_v7 = vld [vmem:[%s1778_s6 + $0x58] sm:$0xff]   ;;  %v1314_v9 = vld [vmem:[%s1778_s6 + $0x60] sm:$0xff]   ;;  %v1316_v11 = vld [vmem:[%s1778_s6 + $0x68] sm:$0xff]  }
  0x87   : > { %1146 = vmatprep.subr.bf16.mxu0 %v1308_v3  ;;  %v1313_v8 = vld [vmem:[%s1778_s6 + $0x18] sm:$0xff]   ;;  %v1315_v10 = vld [vmem:[%s1778_s6 + $0x20] sm:$0xff]   ;;  %v1317_v13 = vld [vmem:[%s1778_s6 + $0x28] sm:$0xff]  }
  0x88   : > { %v1324_v12 = vld [vmem:[%s1771_s12 + $0x4] ss:$8 sps:$4 sm:$0xff]   ;;  %v1322_v18 = vld [vmem:[%s1771_s12] ss:$8 sps:$4 sm:$0xff]  }
  0x89   : > { %607 = vmatprep.mubr.bf16.mxu0 %v1324_v12  ;;  %v1318_v14 = vld [vmem:[%s1778_s6 + $0x70] sm:$0xff]   ;;  %v1320_v16 = vld [vmem:[%s1778_s6 + $0x78] sm:$0xff]   ;;  %v433_v20 = vld [vmem:[#allocation2] sm:$0xff] }
  0x8a   : > { %1147 = vmatpush3.bf16.msra.mxu0 %v1309_v4  ;;  %v1319_v15 = vld [vmem:[%s1778_s6 + $0x30] sm:$0xff]   ;;  %v1321_v17 = vld [vmem:[%s1778_s6 + $0x38] sm:$0xff]   ;;  %v1110_v31 = vld [vmem:[%s1929_s2] ss:$0 sm:$0xff] (!%p1090_p10) }
  0x8b   : > { %1148 = vmatprep.subr.bf16.mxu0 %v1310_v5  ;;  %v434_v24 = vld [vmem:[#allocation2 + $0x8] sm:$0xff] }
  0x8e   : > { %1149 = vmatpush3.bf16.msra.mxu0 %v1311_v6 }
  0x8f   : > { %1150 = vmatprep.subr.bf16.mxu0 %v1312_v7 }
  0x92   : > { %1151 = vmatpush3.bf16.msra.mxu0 %v1313_v8 }
  0x93   : > { %1152 = vmatprep.subr.bf16.mxu0 %v1314_v9 }
  0x96   : > { %1153 = vmatpush3.bf16.msra.mxu0 %v1315_v10 }
  0x97   : > { %1154 = vmatprep.subr.bf16.mxu0 %v1316_v11 }
  0x9a   : > { %1155 = vmatpush3.bf16.msra.mxu0 %v1317_v13 }
  0x9b   : > { %1156 = vmatprep.subr.bf16.mxu0 %v1318_v14 }
  0x9e   : > { %1157 = vmatpush3.bf16.msra.mxu0 %v1319_v15 }
  0x9f   : > { %1158 = vmatprep.subr.bf16.mxu0 %v1320_v16 }
  0xa2   : > { %1159 = vmatpush3.bf16.msra.mxu0 %v1321_v17 }
  0xa5   : > { %608 = vmatmul.mubr.bf16.vlgmr.msra.gmra.mrb[0].mxu0 %v1322_v18 }
 0x178   : > { %v1160_v19 = vpop.f32.mrb[0].mxu0 }
 0x179   : > { %v1161_v21 = vpop.f32.mrb[1].mxu0 }
 0x17a   : > { %v1162_v22 = vadd.f32 %v1161_v21, %v1160_v19  ;;  %v1163_v23 = vpop.f32.mrb[2].mxu0  ;;  %622 = sbr.rel (%p1090_p10) target bundleno = 397 (0x18d), region = 64 }
 0x17b   : > { %v1164_v25 = vpop.f32.mrb[3].mxu0 }
 0x17c   : > { %v616_v26 = vadd.f32 %v1162_v22, %v433_v20  ;;  %v1165_v27 = vadd.f32 %v1164_v25, %v1163_v23 }
 0x17e   : > { %618 = vst [vmem:[#allocation2] sm:$0xff] %v616_v26  ;;  %v617_v28 = vadd.f32 %v1165_v27, %v434_v24 }
 0x180   : > { %619 = vst [vmem:[#allocation2 + $0x8] sm:$0xff] %v617_v28 }
 0x185   : > { %v623_v29 = vld [vmem:[#allocation2] sm:$0xff] }
 0x186   : > { %v632_v32 = vadd.f32 %v1110_v31, %v623_v29 }
 0x187   : > { %v624_v30 = vld [vmem:[#allocation2 + $0x8] sm:$0xff] }
 0x188   : > { %v633_v33 = vadd.f32 %v1110_v31, %v624_v30 }
 0x18a   : > { %v634_v34 = vpack.c.bf16 %v633_v33, %v632_v32 }
 0x18c   : > { %635 = vst [vmem:[#allocation3] sm:$0xff] %v634_v34 }
 0x18d PF: > { %p1111_p0 = scmp.lt.s32.totalorder %s1547_s22, 1 }
 0x18e   : > { %v1325_v35 = vld [vmem:[%s1788_s17 + $0x4] ss:$12 sps:$4 sm:$0xff] (!%p1111_p0)   ;;  %v1567_v36 = vmov (!%p1111_p0), 0.0   ;;  %v1327_v37 = vld [vmem:[%s1788_s17 + $0x8] ss:$12 sps:$4 sm:$0xff] (!%p1111_p0)   ;;  %vm1568_vm0 = vmmov (!%p1111_p0), 0   ;;  %v675_v62 = vlaneseq (!%p1111_p0) }
 0x18f   : > { %639 = sbr.rel (%p1111_p0) target bundleno = 650 (0x28a), region = 68  ;;  %1175 = vmatprep.subr.bf16.mxu1 (!%p1111_p0), %v1567_v36  ;;  %1191 = vmatprep.mubr.msk.bf16.mxu1 (!%p1111_p0), %vm1568_vm0, %v1567_v36  ;;  %v1328_v38 = vld [vmem:[%s1788_s17] ss:$12 sps:$4 sm:$0xff] (!%p1111_p0)   ;;  %v1329_v39 = vld [vmem:[%s1788_s17 + $0x1c] ss:$12 sps:$4 sm:$0xff] (!%p1111_p0)   ;;  %v1569_v40 = vmov (!%p1111_p0), 0  }
 0x190   : > { %818 = vmatprep.subr.bf16.mxu0 (!%p1111_p0), %v1325_v35  ;;  %1176 = vmatpush3.bf16.msra.mxu1 (!%p1111_p0), %v1327_v37  ;;  %v1331_v41 = vld [vmem:[%s1788_s17 + $0x20] ss:$12 sps:$4 sm:$0xff] (!%p1111_p0)   ;;  %v1332_v42 = vld [vmem:[%s1788_s17 + $0x18] ss:$12 sps:$4 sm:$0xff] (!%p1111_p0)   ;;  %v1336_v45 = vld [vmem:[%s1788_s17 + $0x30] ss:$12 sps:$4 sm:$0xff] (!%p1111_p0)  }
 0x191   : > { %850 = vmatprep.mubr.bf16.mxu0 (!%p1111_p0), %v1569_v40  ;;  %819 = vmatpush1.bf16.msra.mxu0 (!%p1111_p0), %v1328_v38  ;;  %v1333_v43 = vld [vmem:[%s1788_s17 + $0x34] ss:$12 sps:$4 sm:$0xff] (!%p1111_p0)   ;;  %v1335_v44 = vld [vmem:[%s1788_s17 + $0x38] ss:$12 sps:$4 sm:$0xff] (!%p1111_p0)   ;;  %v1339_v47 = vld [vmem:[%s1788_s17 + $0x50] ss:$12 sps:$4 sm:$0xff] (!%p1111_p0)  }
 0x192   : > { %1177 = vmatprep.subr.bf16.mxu1 (!%p1111_p0), %v1567_v36  ;;  %820 = vmatprep.subr.bf16.mxu0 (!%p1111_p0), %v1329_v39  ;;  %v1337_v46 = vld [vmem:[%s1788_s17 + $0x4c] ss:$12 sps:$4 sm:$0xff] (!%p1111_p0)   ;;  %v1340_v48 = vld [vmem:[%s1788_s17 + $0x48] ss:$12 sps:$4 sm:$0xff] (!%p1111_p0)   ;;  %v1341_v49 = vld [vmem:[%s1788_s17 + $0x64] ss:$12 sps:$4 sm:$0xff] (!%p1111_p0)  }
 0x193   : > { %v1343_v50 = vld [vmem:[%s1788_s17 + $0x68] ss:$12 sps:$4 sm:$0xff] (!%p1111_p0)   ;;  %v1344_v51 = vld [vmem:[%s1788_s17 + $0x60] ss:$12 sps:$4 sm:$0xff] (!%p1111_p0)   ;;  %v1348_v54 = vld [vmem:[%s1788_s17 + $0x78] ss:$12 sps:$4 sm:$0xff] (!%p1111_p0)  }
 0x194   : > { %1178 = vmatpush3.bf16.msra.mxu1 (!%p1111_p0), %v1331_v41  ;;  %v1345_v52 = vld [vmem:[%s1788_s17 + $0x7c] ss:$12 sps:$4 sm:$0xff] (!%p1111_p0)   ;;  %v1347_v53 = vld [vmem:[%s1788_s17 + $0x80] ss:$12 sps:$4 sm:$0xff] (!%p1111_p0)   ;;  %v1351_v56 = vld [vmem:[%s1788_s17 + $0x98] ss:$12 sps:$4 sm:$0xff] (!%p1111_p0)  }
 0x195   : > { %821 = vmatpush1.bf16.msra.mxu0 (!%p1111_p0), %v1332_v42  ;;  %1179 = vmatprep.subr.bf16.mxu1 (!%p1111_p0), %v1567_v36  ;;  %v1349_v55 = vld [vmem:[%s1788_s17 + $0x94] ss:$12 sps:$4 sm:$0xff] (!%p1111_p0)   ;;  %v1352_v57 = vld [vmem:[%s1788_s17 + $0x90] ss:$12 sps:$4 sm:$0xff] (!%p1111_p0)   ;;  %v1353_v58 = vld [vmem:[%s1788_s17 + $0xac] ss:$12 sps:$4 sm:$0xff] (!%p1111_p0)  }
 0x196   : > { %822 = vmatprep.subr.bf16.mxu0 %v1333_v43  ;;  %v1355_v59 = vld [vmem:[%s1788_s17 + $0xb0] ss:$12 sps:$4 sm:$0xff]   ;;  %v1356_v60 = vld [vmem:[%s1788_s17 + $0xa8] ss:$12 sps:$4 sm:$0xff]   ;;  %v676_v63 = vshrl.u32 %v675_v62, 7 }
 0x197   : > { %v640_v61 = vld [vmem:[#allocation3] sm:$0xff]  ;;  %v673_v1 = vld [vmem:[%s412_s9] sm:$0x7] }
 0x198   : > { %1180 = vmatpush3.bf16.msra.mxu1 %v1335_v44  ;;  %v685_v0 = vsub.s32 2, %v676_v63  ;;  %v677_v2 = vsub.s32 0, %v676_v63  ;;  %v681_v3 = vsub.s32 1, %v676_v63 }
 0x199   : > { %823 = vmatpush1.bf16.msra.mxu0 %v1336_v45  ;;  %1181 = vmatprep.subr.bf16.mxu1 %v1567_v36 }
 0x19a   : > { %824 = vmatprep.subr.bf16.mxu0 %v1337_v46  ;;  %v686_v4 = vrot.slane %v673_v1, %v685_v0  ;;  %v678_v5 = vrot.slane %v673_v1, %v677_v2  ;;  %v682_v6 = vrot.slane %v673_v1, %v681_v3 }
 0x19c   : > { %1182 = vmatpush3.bf16.msra.mxu1 %v1339_v47 }
 0x19d   : > { %825 = vmatpush1.bf16.msra.mxu0 %v1340_v48  ;;  %1183 = vmatprep.subr.bf16.mxu1 %v1567_v36 }
 0x19e   : > { %826 = vmatprep.subr.bf16.mxu0 %v1341_v49 }
 0x1a0   : > { %1184 = vmatpush3.bf16.msra.mxu1 %v1343_v50 }
 0x1a1   : > { %827 = vmatpush1.bf16.msra.mxu0 %v1344_v51  ;;  %1185 = vmatprep.subr.bf16.mxu1 %v1567_v36 }
 0x1a2   : > { %828 = vmatprep.subr.bf16.mxu0 %v1345_v52 }
 0x1a4   : > { %1186 = vmatpush3.bf16.msra.mxu1 %v1347_v53 }
 0x1a5   : > { %829 = vmatpush1.bf16.msra.mxu0 %v1348_v54  ;;  %1187 = vmatprep.subr.bf16.mxu1 %v1567_v36 }
 0x1a6   : > { %830 = vmatprep.subr.bf16.mxu0 %v1349_v55 }
 0x1a8   : > { %1188 = vmatpush3.bf16.msra.mxu1 %v1351_v56 }
 0x1a9   : > { %831 = vmatpush1.bf16.msra.mxu0 %v1352_v57  ;;  %1189 = vmatprep.subr.bf16.mxu1 %v1567_v36 }
 0x1aa   : > { %832 = vmatprep.subr.bf16.mxu0 %v1353_v58 }
 0x1ac   : > { %1190 = vmatpush3.bf16.msra.mxu1 %v1355_v59 }
 0x1ad   : > { %833 = vmatpush1.bf16.msra.mxu0 %v1356_v60 }
 0x1af   : > { %1192 = vmatmul.mubr.bf16.vlgmr.msra.gmra.mrb[0].mxu1 %v640_v61 }
 0x1b0   : > { %851 = vmatmul.mubr.bf16.vlgmr.msra.gmra.mrb[0].mxu0 %v640_v61 }
 0x282   : > { %v895_v7 = vpop.f32.mrb[0].mxu1 }
 0x283   : > { %v896_v8 = vadd.f32 %v895_v7, %v686_v4  ;;  %v852_v9 = vpop.f32.mrb[0].mxu0  ;;  %v1193_v10 = vpop.f32.mrb[1].mxu1 }
 0x284   : > { %v853_v11 = vadd.f32 %v852_v9, %v678_v5  ;;  %v854_v12 = vpop.f32.mrb[1].mxu0  ;;  %v898_v13 = vpop.f32.mrb[2].mxu1 }
 0x285   : > { %904 = vst [vmem:[%s1805_s11 + $0x10] sm:$0xff] %v896_v8  ;;  %v855_v14 = vadd.f32 %v854_v12, %v682_v6  ;;  %v899_v15 = vadd.f32 %v898_v13, %v686_v4  ;;  %v856_v16 = vpop.f32.mrb[2].mxu0  ;;  %v1194_v17 = vpop.f32.mrb[3].mxu1 }
 0x286   : > { %902 = vst [vmem:[%s1805_s11] sm:$0xff] %v853_v11  ;;  %v857_v18 = vadd.f32 %v856_v16, %v678_v5  ;;  %v858_v19 = vpop.f32.mrb[3].mxu0 }
 0x287   : > { %903 = vst [vmem:[%s1805_s11 + $0x8] sm:$0xff] %v855_v14  ;;  %907 = vst [vmem:[%s1805_s11 + $0x28] sm:$0xff] %v899_v15  ;;  %v859_v20 = vadd.f32 %v858_v19, %v682_v6 }
 0x288   : > { %905 = vst [vmem:[%s1805_s11 + $0x18] sm:$0xff] %v857_v18 }
 0x289   : > { %906 = vst [vmem:[%s1805_s11 + $0x20] sm:$0xff] %v859_v20 }
 0x28a PF: > { %s1143_s15 = smul.u32 384, %s1965_s28  ;;  %s928_s7 = sshll.u32 %s1805_s11, 4  ;;  %s1877_s7 = int_to_ptr.vmem [resolvable:$true] %s928_s7 }
 0x28b   : > { %s909_s25 = scalar_lea.sflag [#allocation6], %s1785_s8  ;;  %s1447_s27 = scalar_lea.vmem %s1877_s7, 768 }
 0x28c   : > { %s1875_s17 = scalar_lea.hbm %s1932_s5, %s1143_s15  ;;  %p1448_p1 = scmp.ne.s32.totalorder %s1877_s7, %s1447_s27 }
 0x28d   : > { %p1955_p3 = scmp.ne.s32.totalorder %s1947_s14, 0  ;;  %s1570_s20 = smov [#allocation10]  }
 0x28e   : > { %s1451_s30 = sshll.u32 %s1570_s20, 4  ;;  %s1452_s30 = int_to_ptr.vmem [resolvable:$false] %s1451_s30 }
 0x28f   : > { %p1449_p13 = pnand %p1448_p1, %p1955_p3  ;;  %s1453_s28 = scalar_lea.vmem %s1452_s30, 1536 }
 0x290   : > { %p1454_p2 = scmp.lt.s32.totalorder %s1877_s7, %s1452_s30  ;;  %p1455_p12 = scmp.lt.s32.totalorder %s1453_s28, %s1447_s27 }
 0x291   : > { %p1450_p9 = pneg %p1449_p13 }
 0x292   : > { %p1456_p8 = por %p1455_p12, %p1454_p2 }
 0x294   : > { %p1457_p5 = pnand %p1456_p8, %p1450_p9 }
 0x296   : > { %1460 = shalt.err (!%p1457_p5)
}
 0x297   : > { %s1461_s9 = scalar_lea.hbm %s1875_s17, 768  ;;  %s1465_s12 = scalar_lea.hbm %s1932_s5, 768 }
 0x298   : > { %p1462_p11 = scmp.ne.s32.totalorder %s1875_s17, %s1461_s9  ;;  %p1466_p6 = scmp.lt.u32.totalorder %s1875_s17, %s1932_s5 }
 0x299   : > { %p1467_p10 = scmp.lt.u32.totalorder %s1465_s12, %s1461_s9  ;;  %p1469_p1 = scmp.lt.u32.totalorder %s1461_s9, %s1875_s17 }
 0x29a   : > { %p1463_p4 = pnand %p1462_p11, %p1955_p3 }
 0x29b   : > { %p1468_p0 = por %p1467_p10, %p1466_p6 }
 0x29c   : > { %p1464_p7 = pneg %p1463_p4 }
 0x29d   : > { %p1470_p13 = por %p1469_p1, %p1468_p0 }
 0x29f   : > { %p1471_p9 = pnand %p1470_p13, %p1464_p7 }
 0x2a1   : > { %1474 = shalt.err (!%p1471_p9)
}
 0x2a2   : > { %s1571_s15 = smov 384   ;;  %s1572_s6 = smov 24  }
 0x2a3   : > { %1204 = dma.vmem_to_hbm [thread:$0]  (%p1955_p3), %s1877_s7, 768, %s1875_s17, %s909_s25, %s1571_s15, %s1571_s15, %s1572_s6  }
 0x2a4 PF: > { %s943_s16 = sand.u32 1, %s1531_s18   ;;  %p1956_p2 = scmp.ne.s32.totalorder %s1948_s29, 0 }
 0x2a5   : > { %p1957_p12 = scmp.ge.s32.totalorder %s1555_s24, 2  ;;  %s944_s27 = scalar_lea.sflag [#allocation6], %s943_s16 }
 0x2a7   : > { %p1217_p8 = pnand %p1957_p12, %p1956_p2 }
 0x2a9   : > { %1524 = dma.done.wait (!%p1217_p8), %s944_s27, 768  }
 0x2aa   : > { %1526 = vsyncadd (!%p1217_p8), %s944_s27, 4294966528  ;;  %s24_s24 = sadd.s32 1, %s1555_s24   ;;  %s1958_s18 = smov %s1535_s19 }
 0x2ab   : > { %p21_p5 = scmp.ge.s32.totalorder %s24_s24, 4   ;;  %s1912_s19 = smov 0  }
 0x2ac   : > { %s1959_s20 = smov %s1543_s21  ;;  %s1917_s21 = smov 0  }
 0x2ad   : > { %s1960_s22 = smov %s1551_s23  ;;  %s1961_s23 = smov %s1963_s26 }
 0x2ae   :  { %23 = sbr.rel (!%p21_p5) target bundleno = 9 (0x9), region = 128 }
 0x2b5   :  { %949 = vsyncpa [#allocation5], 1 }
 0x2b6   :  { %951 = vsyncpa [#allocation5 + $0x1], 1 }
 0x2b7   :  { %952 = vsyncpa [#allocation8], 1 }
 0x2b8   :  { %954 = vsyncpa [#allocation8 + $0x1], 1 }
 0x2b9   :  { %955 = vsyncpa [#allocation6], 1 }
 0x2ba   :  { %957 = vsyncpa [#allocation6 + $0x1], 1 }

</bundles_post_ra>
